<compile_context>
chip_gen: v7x
topology: tpu7x:2x2x1
jax: 0.10.0
libtpu: 0.0.40
codegen_flags: <defaults>
</compile_context>

<pallas_src>
import jax
import jax.numpy as jnp
from jax.experimental import pallas as pl
from jax.experimental.pallas import tpu as pltpu

EPS = 1e-5  # torch.nn.LayerNorm default

# Packed parameter slab layout ([8, 2H], f32). Columns 0:H = text, H:2H = image
# for the per-modality rows; final-projection rows use columns 0:H only.
#   row 0: b_p        row 1: b_g1      row 2: gate ln_w   row 3: gate ln_b
#   row 4: w_g2       row 5: final b   row 6: final ln_w  row 7: final ln_b
_N_SLAB_ROWS = 8


def _layernorm(x, gamma, beta):
    # Dependency-free variance: E[x^2] - mean^2 (both reductions can overlap).
    mean = jnp.mean(x, axis=-1, keepdims=True)
    mean_sq = jnp.mean(x * x, axis=-1, keepdims=True)
    var = mean_sq - mean * mean  # biased, like PyTorch
    return (x - mean) * jax.lax.rsqrt(var + EPS) * gamma + beta


def gating_fusion_kernel(x_ref, wp_ref, wg1_ref, wf_ref, prm_ref, bg2_ref, out_ref):
    """x:[TM, Da+Db] bf16 | wp:[Da+Db,2H] | wg1:[2H,2H] | wf:[H,H] | prm:[8,2H] f32
       bg2:[2] f32 (SMEM) | out:[TM, H+2] bf16 (cols 0:H fused, H:H+2 gates)."""
    H = wf_ref.shape[0]

    x = x_ref[...].astype(jnp.float32)

    # Both modality projections in one block-diagonal matmul: [TM, 2H]
    pp = jnp.dot(x, wp_ref[...], preferred_element_type=jnp.float32) + prm_ref[0:1, :]
    # Both gate Linear(H,H) in one block-diagonal matmul: [TM, 2H]
    hh = jnp.dot(pp, wg1_ref[...], preferred_element_type=jnp.float32) + prm_ref[1:2, :]

    def gate(c0, c1, m):
        h = hh[:, c0:c1]
        h = _layernorm(h, prm_ref[2:3, c0:c1], prm_ref[3:4, c0:c1])
        h = jnp.maximum(h, 0.0)
        # Linear(H, 1) as broadcast-mul + lane reduction; scalar bias from SMEM.
        logit = jnp.sum(h * prm_ref[4:5, c0:c1], axis=-1, keepdims=True) + bg2_ref[m]
        return jax.nn.sigmoid(logit)

    ga = gate(0, H, 0)          # [TM, 1]
    gb = gate(H, 2 * H, 1)      # [TM, 1]

    # fused = sum_m gate_m * proj_m
    fused = ga * pp[:, 0:H] + gb * pp[:, H:2 * H]

    # final_proj: Linear(H,H) -> LayerNorm -> ReLU -> Dropout (eval => identity)
    f = jnp.dot(fused, wf_ref[...], preferred_element_type=jnp.float32) + prm_ref[5:6, 0:H]
    f = _layernorm(f, prm_ref[6:7, 0:H], prm_ref[7:8, 0:H])
    f = jnp.maximum(f, 0.0)
    # TODO(synk): training-mode dropout (would need pltpu.prng_seed/prng_random_bits).

    out_ref[...] = jnp.concatenate([f, ga, gb], axis=-1).astype(out_ref.dtype)


def _round_up(x, m):
    return ((x + m - 1) // m) * m


def _choose_tile(batch):
    """Batch tile: multiple of 8, capped at 1024, >=2 grid steps for non-tiny B."""
    cap = 1024
    if batch <= 16:
        return _round_up(max(batch, 1), 8)
    return min(cap, _round_up((batch + 1) // 2, 8))


def pack_params(params, modality_order=("text", "image")):
    """One-time packing of all weights/params (call once at param-load time)."""
    a, b = modality_order
    H = params["final"]["w"].shape[0]
    Da = params[a]["w_p"].shape[1]
    Db = params[b]["w_p"].shape[1]
    D, H2 = Da + Db, 2 * H

    # Block-diagonal projection weight [Da+Db, 2H].
    wp = jnp.zeros((D, H2), jnp.float32)
    wp = wp.at[:Da, :H].set(params[a]["w_p"].T.astype(jnp.float32))
    wp = wp.at[Da:, H:].set(params[b]["w_p"].T.astype(jnp.float32))

    # Block-diagonal gate Linear(H,H) weight [2H, 2H].
    wg1 = jnp.zeros((H2, H2), jnp.float32)
    wg1 = wg1.at[:H, :H].set(params[a]["w_g1"].T.astype(jnp.float32))
    wg1 = wg1.at[H:, H:].set(params[b]["w_g1"].T.astype(jnp.float32))

    wf = params["final"]["w"].T.astype(jnp.float32)  # [H, H]

    def pair(key):
        return jnp.concatenate(
            [params[a][key].reshape(1, H), params[b][key].reshape(1, H)], axis=-1)

    def fin(key):
        return jnp.concatenate(
            [params["final"][key].reshape(1, H), jnp.zeros((1, H), jnp.float32)], axis=-1)

    slab = jnp.concatenate(
        [pair("b_p"), pair("b_g1"), pair("ln_w"), pair("ln_b"), pair("w_g2"),
         fin("b"), fin("ln_w"), fin("ln_b")], axis=0).astype(jnp.float32)
    assert slab.shape == (_N_SLAB_ROWS, H2)

    bg2 = jnp.concatenate(
        [params[a]["b_g2"].reshape(1), params[b]["b_g2"].reshape(1)]).astype(jnp.float32)

    return {"wp": wp, "wg1": wg1, "wf": wf, "slab": slab, "bg2": bg2,
            "dims": (Da, Db, H), "order": (a, b)}


def gating_fusion(embeddings, packed):
    """embeddings: {'text': [B, Da], 'image': [B, Db]} -> (fused [B,H] bf16, gates dict)."""
    a, b = packed["order"]
    Da, Db, H = packed["dims"]
    xa, xb = embeddings[a], embeddings[b]
    B = xa.shape[0]
    D, H2, OUT_W = Da + Db, 2 * H, H + 2

    # bf16 activation I/O; single concatenated activation slab per tile.
    x = jnp.concatenate([xa, xb], axis=-1).astype(jnp.bfloat16)
    TM = _choose_tile(B)
    B_pad = _round_up(B, TM)
    if B_pad != B:
        x = jnp.pad(x, ((0, B_pad - B), (0, 0)))
    grid = (B_pad // TM,)

    # Resident (constant index-map) operands: single-buffered if supported.
    resident = {}
    if hasattr(pl, "Buffered"):
        resident["pipeline_mode"] = pl.Buffered(buffer_count=1)

    in_specs = [
        pl.BlockSpec((TM, D), lambda i: (i, 0)),                  # activation tile
        pl.BlockSpec((D, H2), lambda i: (0, 0), **resident),      # wp (block-diag)
        pl.BlockSpec((H2, H2), lambda i: (0, 0), **resident),     # wg1 (block-diag)
        pl.BlockSpec((H, H), lambda i: (0, 0), **resident),       # wf
        pl.BlockSpec((_N_SLAB_ROWS, H2), lambda i: (0, 0), **resident),  # param slab
        pl.BlockSpec(memory_space=pltpu.MemorySpace.SMEM),        # scalar gate biases
    ]
    out_specs = pl.BlockSpec((TM, OUT_W), lambda i: (i, 0))

    # Explicit VMEM budget: 2x-buffered activation tiles + single-buffered weights.
    weight_bytes = (D * H2 + H2 * H2 + H * H + _N_SLAB_ROWS * H2) * 4
    act_bytes = TM * D * 2 + TM * OUT_W * 2
    est = 4 * act_bytes + 2 * weight_bytes + (4 << 20)
    vmem_limit = int(min(max(est, 32 << 20), 64 << 20))

    out = pl.pallas_call(
        gating_fusion_kernel,
        grid=grid,
        in_specs=in_specs,
        out_specs=out_specs,
        out_shape=jax.ShapeDtypeStruct((B_pad, OUT_W), jnp.bfloat16),
        compiler_params=pltpu.CompilerParams(
            dimension_semantics=("parallel",),
            vmem_limit_bytes=vmem_limit),
    )(x, packed["wp"], packed["wg1"], packed["wf"], packed["slab"], packed["bg2"])

    fused = out[:B, :H]
    gates = {a: out[:B, H:H + 1], b: out[:B, H + 1:H + 2]}
    return fused, gates


def _init_params(key, input_dims, hidden_dim):
    params = {}
    for name, dim in input_dims.items():
        key, k1, k2, k3, k4, k5, k6 = jax.random.split(key, 7)
        params[name] = {
            "w_p":  0.1 * jax.random.normal(k1, (hidden_dim, dim), jnp.float32),
            "b_p":  0.1 * jax.random.normal(k2, (1, hidden_dim), jnp.float32),
            "w_g1": 0.1 * jax.random.normal(k3, (hidden_dim, hidden_dim), jnp.float32),
            "b_g1": 0.1 * jax.random.normal(k4, (1, hidden_dim), jnp.float32),
            "ln_w": jnp.ones((1, hidden_dim), jnp.float32),
            "ln_b": jnp.zeros((1, hidden_dim), jnp.float32),
            "w_g2": 0.1 * jax.random.normal(k5, (1, hidden_dim), jnp.float32),  # Linear(H,1).weight
            "b_g2": 0.1 * jax.random.normal(k6, (1, 1), jnp.float32),
        }
    key, k1, k2 = jax.random.split(key, 3)
    params["final"] = {
        "w":    0.1 * jax.random.normal(k1, (hidden_dim, hidden_dim), jnp.float32),
        "b":    0.1 * jax.random.normal(k2, (1, hidden_dim), jnp.float32),
        "ln_w": jnp.ones((1, hidden_dim), jnp.float32),
        "ln_b": jnp.zeros((1, hidden_dim), jnp.float32),
    }
    return params


def _reference(embeddings, params):
    """Pure-JAX f32 reference mirroring the PyTorch forward (eval mode)."""
    def ln(x, g, b):
        m = jnp.mean(x, axis=-1, keepdims=True)
        v = jnp.mean((x - m) ** 2, axis=-1, keepdims=True)
        return (x - m) / jnp.sqrt(v + EPS) * g + b

    projected, gates = {}, {}
    for name, x in embeddings.items():
        p = params[name]
        proj = x @ p["w_p"].T + p["b_p"]
        h = proj @ p["w_g1"].T + p["b_g1"]
        h = jnp.maximum(ln(h, p["ln_w"], p["ln_b"]), 0.0)
        gates[name] = jax.nn.sigmoid(h @ p["w_g2"].T + p["b_g2"])
        projected[name] = proj
    fused = sum(gates[n] * projected[n] for n in embeddings)
    f = fused @ params["final"]["w"].T + params["final"]["b"]
    f = jnp.maximum(ln(f, params["final"]["ln_w"], params["final"]["ln_b"]), 0.0)
    return f, gates


if __name__ == "__main__":
    input_dims = {"text": 24, "image": 48}
    hidden_dim = 32
    batch = 4

    key = jax.random.PRNGKey(0)
    key, kx1, kx2, kp = jax.random.split(key, 4)
    embeddings = {
        "text":  jax.random.normal(kx1, (batch, input_dims["text"]), jnp.float32),
        "image": jax.random.normal(kx2, (batch, input_dims["image"]), jnp.float32),
    }
    params = _init_params(kp, input_dims, hidden_dim)

    # Weight packing is hoisted: done once at "load time", reused per forward.
    packed = pack_params(params)

    fused, gates = gating_fusion(embeddings, packed)
    fused = jax.block_until_ready(fused)
    gates = jax.tree_util.tree_map(jax.block_until_ready, gates)

    # Compare against the f32 reference on bf16-quantized inputs (kernel uses bf16 I/O).
    emb_q = {k: v.astype(jnp.bfloat16).astype(jnp.float32) for k, v in embeddings.items()}
    ref_fused, ref_gates = _reference(emb_q, params)

    assert fused.shape == (batch, hidden_dim)
    assert gates["text"].shape == (batch, 1) and gates["image"].shape == (batch, 1)
    assert jnp.allclose(fused.astype(jnp.float32), ref_fused, atol=2e-2, rtol=2e-2)
    assert jnp.allclose(gates["text"].astype(jnp.float32), ref_gates["text"], atol=1e-2, rtol=1e-2)
    assert jnp.allclose(gates["image"].astype(jnp.float32), ref_gates["image"], atol=1e-2, rtol=1e-2)

    print("KERNEL_OK")
</pallas_src>

<mosaic_0001>
module attributes {stable_mosaic.version = 11 : i64} {
  func.func @gating_fusion_kernel(%arg0: i32, %arg1: memref<8x72xbf16, #tpu.memory_space<vmem>>, %arg2: memref<72x64xf32, #tpu.memory_space<vmem>>, %arg3: memref<64x64xf32, #tpu.memory_space<vmem>>, %arg4: memref<32x32xf32, #tpu.memory_space<vmem>>, %arg5: memref<8x64xf32, #tpu.memory_space<vmem>>, %arg6: memref<2xf32, #tpu.memory_space<smem>>, %arg7: memref<8x34xbf16, #tpu.memory_space<vmem>>) attributes {dimension_semantics = [#tpu.dimension_semantics<parallel>], iteration_bounds = array<i64: 1>, scalar_prefetch = 0 : i64, scratch_operands = 0 : i64, tpu.core_type = #tpu.core_type<tc>, window_params = [{transform_indices = @transform_0, window_bounds = array<i64: 8, 72>}, {pipeline_mode = #tpu.pipeline_mode<synchronous>, transform_indices = @transform_1, window_bounds = array<i64: 72, 64>}, {pipeline_mode = #tpu.pipeline_mode<synchronous>, transform_indices = @transform_2, window_bounds = array<i64: 64, 64>}, {pipeline_mode = #tpu.pipeline_mode<synchronous>, transform_indices = @transform_3, window_bounds = array<i64: 32, 32>}, {pipeline_mode = #tpu.pipeline_mode<synchronous>, transform_indices = @transform_4, window_bounds = array<i64: 8, 64>}, {transform_indices = @transform_5, window_bounds = array<i64: 2>}, {transform_indices = @transform_6, window_bounds = array<i64: 8, 34>}]} {
    %c0 = arith.constant 0 : index
    %c0_0 = arith.constant 0 : index
    %0 = vector.load %arg1[%c0, %c0_0] : memref<8x72xbf16, #tpu.memory_space<vmem>>, vector<8x72xbf16>
    %1 = arith.extf %0 : vector<8x72xbf16> to vector<8x72xf32>
    %c0_1 = arith.constant 0 : index
    %c0_2 = arith.constant 0 : index
    %2 = vector.load %arg2[%c0_1, %c0_2] : memref<72x64xf32, #tpu.memory_space<vmem>>, vector<72x64xf32>
    %cst = arith.constant dense<0.000000e+00> : vector<8x64xf32>
    %3 = tpu.matmul %1, %2, %cst {dimension_numbers = #tpu.dot_dimension_numbers<[1], [0], [0], [1], [0, 0, 1, 1], [], []>} : vector<8x72xf32>, vector<72x64xf32>, vector<8x64xf32> -> vector<8x64xf32>
    %c0_3 = arith.constant 0 : index
    %c0_4 = arith.constant 0 : index
    %4 = vector.load %arg5[%c0_3, %c0_4] : memref<8x64xf32, #tpu.memory_space<vmem>>, vector<1x64xf32>
    %5 = vector.broadcast %4 : vector<1x64xf32> to vector<8x64xf32>
    %6 = arith.addf %3, %5 : vector<8x64xf32>
    %c0_5 = arith.constant 0 : index
    %c0_6 = arith.constant 0 : index
    %7 = vector.load %arg3[%c0_5, %c0_6] : memref<64x64xf32, #tpu.memory_space<vmem>>, vector<64x64xf32>
    %cst_7 = arith.constant dense<0.000000e+00> : vector<8x64xf32>
    %8 = tpu.matmul %6, %7, %cst_7 {dimension_numbers = #tpu.dot_dimension_numbers<[1], [0], [0], [1], [0, 0, 1, 1], [], []>} : vector<8x64xf32>, vector<64x64xf32>, vector<8x64xf32> -> vector<8x64xf32>
    %c1 = arith.constant 1 : index
    %c0_8 = arith.constant 0 : index
    %9 = vector.load %arg5[%c1, %c0_8] : memref<8x64xf32, #tpu.memory_space<vmem>>, vector<1x64xf32>
    %10 = vector.broadcast %9 : vector<1x64xf32> to vector<8x64xf32>
    %11 = arith.addf %8, %10 : vector<8x64xf32>
    %12 = vector.extract_strided_slice %11 {offsets = [0, 0], sizes = [8, 32], strides = [1, 1]} : vector<8x64xf32> to vector<8x32xf32>
    %c2 = arith.constant 2 : index
    %c0_9 = arith.constant 0 : index
    %13 = vector.load %arg5[%c2, %c0_9] : memref<8x64xf32, #tpu.memory_space<vmem>>, vector<1x32xf32>
    %c3 = arith.constant 3 : index
    %c0_10 = arith.constant 0 : index
    %14 = vector.load %arg5[%c3, %c0_10] : memref<8x64xf32, #tpu.memory_space<vmem>>, vector<1x32xf32>
    %cst_11 = arith.constant dense<0.000000e+00> : vector<8xf32>
    %15 = vector.multi_reduction <add>, %12, %cst_11 [1] : vector<8x32xf32> to vector<8xf32>
    %16 = vector.shape_cast %15 : vector<8xf32> to vector<8x1xf32>
    %cst_12 = arith.constant 3.200000e+01 : f32
    %17 = vector.broadcast %cst_12 : f32 to vector<8x1xf32>
    %18 = arith.divf %16, %17 : vector<8x1xf32>
    %19 = arith.mulf %12, %12 : vector<8x32xf32>
    %cst_13 = arith.constant dense<0.000000e+00> : vector<8xf32>
    %20 = vector.multi_reduction <add>, %19, %cst_13 [1] : vector<8x32xf32> to vector<8xf32>
    %21 = vector.shape_cast %20 : vector<8xf32> to vector<8x1xf32>
    %cst_14 = arith.constant 3.200000e+01 : f32
    %22 = vector.broadcast %cst_14 : f32 to vector<8x1xf32>
    %23 = arith.divf %21, %22 : vector<8x1xf32>
    %24 = arith.mulf %18, %18 : vector<8x1xf32>
    %25 = arith.subf %23, %24 : vector<8x1xf32>
    %26 = vector.broadcast %18 : vector<8x1xf32> to vector<8x32xf32>
    %27 = arith.subf %12, %26 : vector<8x32xf32>
    %cst_15 = arith.constant 9.99999974E-6 : f32
    %28 = vector.broadcast %cst_15 : f32 to vector<8x1xf32>
    %29 = arith.addf %25, %28 : vector<8x1xf32>
    %30 = math.rsqrt %29 : vector<8x1xf32>
    %31 = vector.broadcast %30 : vector<8x1xf32> to vector<8x32xf32>
    %32 = arith.mulf %27, %31 : vector<8x32xf32>
    %33 = vector.broadcast %13 : vector<1x32xf32> to vector<8x32xf32>
    %34 = arith.mulf %32, %33 : vector<8x32xf32>
    %35 = vector.broadcast %14 : vector<1x32xf32> to vector<8x32xf32>
    %36 = arith.addf %34, %35 : vector<8x32xf32>
    %cst_16 = arith.constant 0.000000e+00 : f32
    %37 = vector.broadcast %cst_16 : f32 to vector<8x32xf32>
    %38 = arith.maximumf %36, %37 : vector<8x32xf32>
    %c4 = arith.constant 4 : index
    %c0_17 = arith.constant 0 : index
    %39 = vector.load %arg5[%c4, %c0_17] : memref<8x64xf32, #tpu.memory_space<vmem>>, vector<1x32xf32>
    %40 = vector.broadcast %39 : vector<1x32xf32> to vector<8x32xf32>
    %41 = arith.mulf %38, %40 : vector<8x32xf32>
    %cst_18 = arith.constant dense<0.000000e+00> : vector<8xf32>
    %42 = vector.multi_reduction <add>, %41, %cst_18 [1] : vector<8x32xf32> to vector<8xf32>
    %43 = vector.shape_cast %42 : vector<8xf32> to vector<8x1xf32>
    %c0_19 = arith.constant 0 : index
    %44 = memref.load %arg6[%c0_19] : memref<2xf32, #tpu.memory_space<smem>>
    %45 = vector.broadcast %44 : f32 to vector<8x1xf32>
    %46 = arith.addf %43, %45 : vector<8x1xf32>
    %47 = arith.negf %46 : vector<8x1xf32>
    %48 = math.exp %47 : vector<8x1xf32>
    %cst_20 = arith.constant 1.000000e+00 : f32
    %49 = vector.broadcast %cst_20 : f32 to vector<8x1xf32>
    %50 = arith.addf %49, %48 : vector<8x1xf32>
    %51 = arith.divf %49, %50 : vector<8x1xf32>
    %52 = vector.extract_strided_slice %11 {offsets = [0, 32], sizes = [8, 32], strides = [1, 1]} : vector<8x64xf32> to vector<8x32xf32>
    %c2_21 = arith.constant 2 : index
    %c32 = arith.constant 32 : index
    %53 = vector.load %arg5[%c2_21, %c32] : memref<8x64xf32, #tpu.memory_space<vmem>>, vector<1x32xf32>
    %c3_22 = arith.constant 3 : index
    %c32_23 = arith.constant 32 : index
    %54 = vector.load %arg5[%c3_22, %c32_23] : memref<8x64xf32, #tpu.memory_space<vmem>>, vector<1x32xf32>
    %cst_24 = arith.constant dense<0.000000e+00> : vector<8xf32>
    %55 = vector.multi_reduction <add>, %52, %cst_24 [1] : vector<8x32xf32> to vector<8xf32>
    %56 = vector.shape_cast %55 : vector<8xf32> to vector<8x1xf32>
    %cst_25 = arith.constant 3.200000e+01 : f32
    %57 = vector.broadcast %cst_25 : f32 to vector<8x1xf32>
    %58 = arith.divf %56, %57 : vector<8x1xf32>
    %59 = arith.mulf %52, %52 : vector<8x32xf32>
    %cst_26 = arith.constant dense<0.000000e+00> : vector<8xf32>
    %60 = vector.multi_reduction <add>, %59, %cst_26 [1] : vector<8x32xf32> to vector<8xf32>
    %61 = vector.shape_cast %60 : vector<8xf32> to vector<8x1xf32>
    %cst_27 = arith.constant 3.200000e+01 : f32
    %62 = vector.broadcast %cst_27 : f32 to vector<8x1xf32>
    %63 = arith.divf %61, %62 : vector<8x1xf32>
    %64 = arith.mulf %58, %58 : vector<8x1xf32>
    %65 = arith.subf %63, %64 : vector<8x1xf32>
    %66 = vector.broadcast %58 : vector<8x1xf32> to vector<8x32xf32>
    %67 = arith.subf %52, %66 : vector<8x32xf32>
    %cst_28 = arith.constant 9.99999974E-6 : f32
    %68 = vector.broadcast %cst_28 : f32 to vector<8x1xf32>
    %69 = arith.addf %65, %68 : vector<8x1xf32>
    %70 = math.rsqrt %69 : vector<8x1xf32>
    %71 = vector.broadcast %70 : vector<8x1xf32> to vector<8x32xf32>
    %72 = arith.mulf %67, %71 : vector<8x32xf32>
    %73 = vector.broadcast %53 : vector<1x32xf32> to vector<8x32xf32>
    %74 = arith.mulf %72, %73 : vector<8x32xf32>
    %75 = vector.broadcast %54 : vector<1x32xf32> to vector<8x32xf32>
    %76 = arith.addf %74, %75 : vector<8x32xf32>
    %cst_29 = arith.constant 0.000000e+00 : f32
    %77 = vector.broadcast %cst_29 : f32 to vector<8x32xf32>
    %78 = arith.maximumf %76, %77 : vector<8x32xf32>
    %c4_30 = arith.constant 4 : index
    %c32_31 = arith.constant 32 : index
    %79 = vector.load %arg5[%c4_30, %c32_31] : memref<8x64xf32, #tpu.memory_space<vmem>>, vector<1x32xf32>
    %80 = vector.broadcast %79 : vector<1x32xf32> to vector<8x32xf32>
    %81 = arith.mulf %78, %80 : vector<8x32xf32>
    %cst_32 = arith.constant dense<0.000000e+00> : vector<8xf32>
    %82 = vector.multi_reduction <add>, %81, %cst_32 [1] : vector<8x32xf32> to vector<8xf32>
    %83 = vector.shape_cast %82 : vector<8xf32> to vector<8x1xf32>
    %c1_33 = arith.constant 1 : index
    %84 = memref.load %arg6[%c1_33] : memref<2xf32, #tpu.memory_space<smem>>
    %85 = vector.broadcast %84 : f32 to vector<8x1xf32>
    %86 = arith.addf %83, %85 : vector<8x1xf32>
    %87 = arith.negf %86 : vector<8x1xf32>
    %88 = math.exp %87 : vector<8x1xf32>
    %cst_34 = arith.constant 1.000000e+00 : f32
    %89 = vector.broadcast %cst_34 : f32 to vector<8x1xf32>
    %90 = arith.addf %89, %88 : vector<8x1xf32>
    %91 = arith.divf %89, %90 : vector<8x1xf32>
    %92 = vector.extract_strided_slice %6 {offsets = [0, 0], sizes = [8, 32], strides = [1, 1]} : vector<8x64xf32> to vector<8x32xf32>
    %93 = vector.broadcast %51 : vector<8x1xf32> to vector<8x32xf32>
    %94 = arith.mulf %93, %92 : vector<8x32xf32>
    %95 = vector.extract_strided_slice %6 {offsets = [0, 32], sizes = [8, 32], strides = [1, 1]} : vector<8x64xf32> to vector<8x32xf32>
    %96 = vector.broadcast %91 : vector<8x1xf32> to vector<8x32xf32>
    %97 = arith.mulf %96, %95 : vector<8x32xf32>
    %98 = arith.addf %94, %97 : vector<8x32xf32>
    %c0_35 = arith.constant 0 : index
    %c0_36 = arith.constant 0 : index
    %99 = vector.load %arg4[%c0_35, %c0_36] : memref<32x32xf32, #tpu.memory_space<vmem>>, vector<32x32xf32>
    %cst_37 = arith.constant dense<0.000000e+00> : vector<8x32xf32>
    %100 = tpu.matmul %98, %99, %cst_37 {dimension_numbers = #tpu.dot_dimension_numbers<[1], [0], [0], [1], [0, 0, 1, 1], [], []>} : vector<8x32xf32>, vector<32x32xf32>, vector<8x32xf32> -> vector<8x32xf32>
    %c5 = arith.constant 5 : index
    %c0_38 = arith.constant 0 : index
    %101 = vector.load %arg5[%c5, %c0_38] : memref<8x64xf32, #tpu.memory_space<vmem>>, vector<1x32xf32>
    %102 = vector.broadcast %101 : vector<1x32xf32> to vector<8x32xf32>
    %103 = arith.addf %100, %102 : vector<8x32xf32>
    %c6 = arith.constant 6 : index
    %c0_39 = arith.constant 0 : index
    %104 = vector.load %arg5[%c6, %c0_39] : memref<8x64xf32, #tpu.memory_space<vmem>>, vector<1x32xf32>
    %c7 = arith.constant 7 : index
    %c0_40 = arith.constant 0 : index
    %105 = vector.load %arg5[%c7, %c0_40] : memref<8x64xf32, #tpu.memory_space<vmem>>, vector<1x32xf32>
    %cst_41 = arith.constant dense<0.000000e+00> : vector<8xf32>
    %106 = vector.multi_reduction <add>, %103, %cst_41 [1] : vector<8x32xf32> to vector<8xf32>
    %107 = vector.shape_cast %106 : vector<8xf32> to vector<8x1xf32>
    %cst_42 = arith.constant 3.200000e+01 : f32
    %108 = vector.broadcast %cst_42 : f32 to vector<8x1xf32>
    %109 = arith.divf %107, %108 : vector<8x1xf32>
    %110 = arith.mulf %103, %103 : vector<8x32xf32>
    %cst_43 = arith.constant dense<0.000000e+00> : vector<8xf32>
    %111 = vector.multi_reduction <add>, %110, %cst_43 [1] : vector<8x32xf32> to vector<8xf32>
    %112 = vector.shape_cast %111 : vector<8xf32> to vector<8x1xf32>
    %cst_44 = arith.constant 3.200000e+01 : f32
    %113 = vector.broadcast %cst_44 : f32 to vector<8x1xf32>
    %114 = arith.divf %112, %113 : vector<8x1xf32>
    %115 = arith.mulf %109, %109 : vector<8x1xf32>
    %116 = arith.subf %114, %115 : vector<8x1xf32>
    %117 = vector.broadcast %109 : vector<8x1xf32> to vector<8x32xf32>
    %118 = arith.subf %103, %117 : vector<8x32xf32>
    %cst_45 = arith.constant 9.99999974E-6 : f32
    %119 = vector.broadcast %cst_45 : f32 to vector<8x1xf32>
    %120 = arith.addf %116, %119 : vector<8x1xf32>
    %121 = math.rsqrt %120 : vector<8x1xf32>
    %122 = vector.broadcast %121 : vector<8x1xf32> to vector<8x32xf32>
    %123 = arith.mulf %118, %122 : vector<8x32xf32>
    %124 = vector.broadcast %104 : vector<1x32xf32> to vector<8x32xf32>
    %125 = arith.mulf %123, %124 : vector<8x32xf32>
    %126 = vector.broadcast %105 : vector<1x32xf32> to vector<8x32xf32>
    %127 = arith.addf %125, %126 : vector<8x32xf32>
    %cst_46 = arith.constant 0.000000e+00 : f32
    %128 = vector.broadcast %cst_46 : f32 to vector<8x32xf32>
    %129 = arith.maximumf %127, %128 : vector<8x32xf32>
    %130 = tpu.concatenate %129, %51, %91 in 1 : vector<8x32xf32>, vector<8x1xf32>, vector<8x1xf32> -> vector<8x34xf32>
    %131 = arith.truncf %130 : vector<8x34xf32> to vector<8x34xbf16>
    %c0_47 = arith.constant 0 : index
    %c0_48 = arith.constant 0 : index
    %132 = vector.load %arg7[%c0_47, %c0_48] : memref<8x34xbf16, #tpu.memory_space<vmem>>, vector<8x34xbf16>
    tpu.vector_store %arg7[%c0_47, %c0_48], %131 {strides = array<i32>} : memref<8x34xbf16, #tpu.memory_space<vmem>>, vector<8x34xbf16>,
    return
  }
  func.func @transform_0(%arg0: i32) -> (i32, i32) {
    %c0_i32 = arith.constant 0 : i32
    %c0_i32_0 = arith.constant 0 : i32
    return %arg0, %c0_i32 : i32, i32
  }
  func.func @transform_1(%arg0: i32) -> (i32, i32) {
    %c0_i32 = arith.constant 0 : i32
    %c0_i32_0 = arith.constant 0 : i32
    %c0_i32_1 = arith.constant 0 : i32
    return %c0_i32, %c0_i32_0 : i32, i32
  }
  func.func @transform_2(%arg0: i32) -> (i32, i32) {
    %c0_i32 = arith.constant 0 : i32
    %c0_i32_0 = arith.constant 0 : i32
    %c0_i32_1 = arith.constant 0 : i32
    return %c0_i32, %c0_i32_0 : i32, i32
  }
  func.func @transform_3(%arg0: i32) -> (i32, i32) {
    %c0_i32 = arith.constant 0 : i32
    %c0_i32_0 = arith.constant 0 : i32
    %c0_i32_1 = arith.constant 0 : i32
    return %c0_i32, %c0_i32_0 : i32, i32
  }
  func.func @transform_4(%arg0: i32) -> (i32, i32) {
    %c0_i32 = arith.constant 0 : i32
    %c0_i32_0 = arith.constant 0 : i32
    %c0_i32_1 = arith.constant 0 : i32
    return %c0_i32, %c0_i32_0 : i32, i32
  }
  func.func @transform_5(%arg0: i32) -> i32 {
    %c0_i32 = arith.constant 0 : i32
    %c0_i32_0 = arith.constant 0 : i32
    return %c0_i32 : i32
  }
  func.func @transform_6(%arg0: i32) -> (i32, i32) {
    %c0_i32 = arith.constant 0 : i32
    %c0_i32_0 = arith.constant 0 : i32
    return %arg0, %c0_i32 : i32, i32
  }
}

</mosaic_0001>

<bundles_post_ra>
// kernel: tpu_custom_call.1
= control target key start
LH: loop header
LB: loop body
LE: loop exit
PB: predicated region body
PF: predicated region fallthrough
CT: control target
= control target key end

     0   :  { %11 = vsyncpa [#allocation4], 0  ;;  %s797_s0 = inlined_call_operand.vmem [shape: bf16[8,72], index: 0, kind: input, shape index: {}]   ;;  %s798_s1 = inlined_call_operand.vmem [shape: f32[72,64], index: 1, kind: input, shape index: {}]   ;;  %s799_s2 = inlined_call_operand.vmem [shape: f32[64,64], index: 2, kind: input, shape index: {}]   ;;  %s800_s3 = inlined_call_operand.vmem [shape: f32[32,32], index: 3, kind: input, shape index: {}]   ;;  %s801_s4 = inlined_call_operand.vmem [shape: f32[8,64], index: 4, kind: input, shape index: {}]   ;;  %s802_s5 = inlined_call_operand.vmem [shape: f32[2], index: 5, kind: input, shape index: {}]   ;;  %s803_s6 = inlined_call_operand.hbm [shape: bf16[8,34], index: 6, kind: output, shape index: {}]  }
   0x1   :  { %12 = vsyncpa [#allocation3], 0  ;;  %s29_s23 = sshll.u32 %s802_s5, 4  ;;  %s30_s23 = int_to_ptr.vmem [resolvable:$true] %s29_s23 }
   0x2   :  { %s581_s24 = scalar_lea.vmem %s30_s23, 16  ;;  %p586_p1 = scmp.lt.s32.totalorder %s30_s23, %s30_s23 }
   0x3   :  { %p582_p0 = scmp.ne.s32.totalorder %s30_s23, %s581_s24  ;;  %p587_p2 = scmp.lt.s32.totalorder %s581_s24, %s581_s24 }
   0x5   :  { %p588_p3 = por %p587_p2, %p586_p1 }
   0x7   :  { %p589_p4 = pnand %p588_p3, %p582_p0 }
   0x9   :  { %592 = shalt.err (!%p589_p4)
}
   0xa   :  { %s619_s25 = smov [#allocation2]  }
   0xb   :  { %32 = dma.vmem_to_smem %s30_s23, 16, %s619_s25, [#allocation4]  }
   0xc   :  { %615 = dma.done.wait [#allocation4], 16  }
   0xd   :  { %616 = vsyncadd [#allocation4], 4294967280 }
   0xe   :  { %36 = sfence }
   0xf   :  { %v39_v0 = vld [vmem:[%s798_s1] sm:$0xff]  ;;  %v40_v1 = vld [vmem:[%s798_s1 + $0x8] sm:$0xff]  ;;  %v41_v2 = vld [vmem:[%s798_s1 + $0x10] sm:$0xff]  ;;  %v620_v3 = vmov 0.0|0.0   ;;  %vm621_vm0 = vmmov 0   ;;  %v622_v6 = vmov 0.0  }
  0x10   :  { %531 = vmatprep.subr.bf16.mxu0 %v620_v3  ;;  %v532_v4 = vpack.c.bf16 %v40_v1, %v39_v0  ;;  %v42_v5 = vld [vmem:[%s798_s1 + $0x18] sm:$0xff]  ;;  %498 = vmatprep.mubr.msk.f32.mxu0 %vm621_vm0, %v622_v6  ;;  %v43_v8 = vld [vmem:[%s798_s1 + $0x20] sm:$0xff]  ;;  %v128_v10 = vld [vmem:[%s799_s2 + $0x8] sm:$0xff]  ;;  %vm53_vm1 = vcmask 588800   ;;  %vm140_vm2 = vcmask 523264   ;;  %vm216_vm3 = vcmask 261120  }
  0x11   :  { %543 = vmatprep.subr.bf16.mxu1 %v620_v3  ;;  %517 = vmatprep.mubr.msk.f32.mxu1 %vm621_vm0, %v622_v6  ;;  %v535_v7 = vpack.c.bf16 %v42_v5, %v41_v2  ;;  %v127_v9 = vld [vmem:[%s799_s2] sm:$0xff]  ;;  %v44_v11 = vld [vmem:[%s798_s1 + $0x28] sm:$0xff]  ;;  %v129_v13 = vld [vmem:[%s799_s2 + $0x10] sm:$0xff]  ;;  %s450_s28 = sld [smem:[#allocation2 + $0x1]]  ;;  %vm422_vm4 = vcmask 269312   ;;  %s624_s10 = smov [#allocation5]  }
  0x12   :  { %533 = vmatpush3.bf16.msra.mxu0 %v532_v4  ;;  %v544_v12 = vpack.c.bf16 %v128_v10, %v127_v9  ;;  %v130_v14 = vld [vmem:[%s799_s2 + $0x18] sm:$0xff]  ;;  %v538_v16 = vpack.c.bf16 %v44_v11, %v43_v8  ;;  %v131_v17 = vld [vmem:[%s799_s2 + $0x20] sm:$0xff]  ;;  %v132_v18 = vld [vmem:[%s799_s2 + $0x28] sm:$0xff]  ;;  %s433_s11 = sshll.u32 %s624_s10, 4  ;;  %vm425_vm5 = vcmask 273408   ;;  %s434_s11 = int_to_ptr.vmem [resolvable:$true] %s433_s11 }
  0x13   :  { %534 = vmatprep.subr.bf16.mxu0 %v620_v3  ;;  %v547_v15 = vpack.c.bf16 %v130_v14, %v129_v13  ;;  %v45_v19 = vld [vmem:[%s798_s1 + $0x30] sm:$0xff]  ;;  %v46_v20 = vld [vmem:[%s798_s1 + $0x38] sm:$0xff]  ;;  %v550_v21 = vpack.c.bf16 %v132_v18, %v131_v17  ;;  %v37_v23 = vld [vmem:[%s797_s0] sm:$0xf]  ;;  %s593_s0 = scalar_lea.vmem %s434_s11, 64  ;;  %p598_p6 = scmp.lt.s32.totalorder %s434_s11, %s434_s11 }
  0x14   :  { %545 = vmatpush3.bf16.msra.mxu1 %v544_v12  ;;  %v541_v22 = vpack.c.bf16 %v46_v20, %v45_v19  ;;  %v47_v24 = vld [vmem:[%s798_s1 + $0x40] sm:$0xff]  ;;  %v38_v25 = vunpack.c.l.bf16 %v37_v23  ;;  %v133_v26 = vld [vmem:[%s799_s2 + $0x30] sm:$0xff]  ;;  %v134_v27 = vld [vmem:[%s799_s2 + $0x38] sm:$0xff]  ;;  %s623_s2 = smov 96   ;;  %p594_p5 = scmp.ne.s32.totalorder %s434_s11, %s593_s0 }
  0x15   :  { %546 = vmatprep.subr.bf16.mxu1 %v620_v3  ;;  %v553_v28 = vpack.c.bf16 %v134_v27, %v133_v26  ;;  %v442_v29 = vld [vmem:[%s801_s4] ss:$0 sm:$0xff]  ;;  %v444_v33 = vld [vmem:[%s801_s4 + $0x1] ss:$0 sm:$0xff]  ;;  %v446_v52 = vld [vmem:[%s801_s4 + $0x2] ss:$0 sm:$0xff]  ;;  %p599_p7 = scmp.lt.s32.totalorder %s593_s0, %s593_s0 }
  0x16   :  { %536 = vmatpush3.bf16.msra.mxu0 %v535_v7  ;;  %v447_v54 = vld [vmem:[%s801_s4 + $0x3] ss:$0 sm:$0xff]  ;;  %v448_v57 = vld [vmem:[%s801_s4 + $0x4] ss:$0 sm:$0xff]  ;;  %v313_v17 = vld [vmem:[%s800_s3 + $0x10] sm:$0xff] }
  0x17   :  { %537 = vmatprep.subr.bf16.mxu0 %v620_v3  ;;  %v314_v19 = vld [vmem:[%s800_s3 + $0x18] sm:$0xff]  ;;  %p600_p8 = por %p599_p7, %p598_p6 }
  0x18   :  { %548 = vmatpush3.bf16.msra.mxu1 %v547_v15  ;;  %v311_v15 = vld [vmem:[%s800_s3] sm:$0xff]  ;;  %v559_v20 = vpack.c.bf16 %v314_v19, %v313_v17 }
  0x19   :  { %549 = vmatprep.subr.bf16.mxu1 %v620_v3  ;;  %p601_p9 = pnand %p600_p8, %p594_p5 }
  0x1a   :  { %539 = vmatpush3.bf16.msra.mxu0 %v538_v16  ;;  %v312_v16 = vld [vmem:[%s800_s3 + $0x8] sm:$0xff]  ;;  %s253_s3 = sld [smem:[#allocation2]] }
  0x1b   :  { %540 = vmatprep.subr.bf16.mxu0 %v620_v3  ;;  %v556_v18 = vpack.c.bf16 %v312_v16, %v311_v15 }
  0x1c   :  { %551 = vmatpush3.bf16.msra.mxu1 %v550_v21  ;;  %v296_v21 = vstv %s450_s28 }
  0x1d   :  { %552 = vmatprep.subr.bf16.mxu1 %v620_v3 }
  0x1e   :  { %542 = vmatpush3.bf16.msra.mxu0 %v541_v22 }
  0x1f   :  { %496 = vmatprep.subr.mxu0 %v622_v6 }
  0x20   :  { %554 = vmatpush3.bf16.msra.mxu1 %v553_v28 }
  0x21   :  { %555 = vmatprep.subr.bf16.mxu1 %v620_v3 }
  0x22   :  { %497 = vmatpush3.msra.mxu0 %v47_v24 }
  0x23   :  { %499 = vmatmul.mubr.msk.f32.vlgmr.msra.gmra.mrb[0].mxu0 %vm53_vm1, %v38_v25 }
  0xf6   :  { %v123_v30 = vpop.f32.mrb[0].mxu0 }
  0xf7   :  { %v731_v31 = vadd.f32 %v442_v29, %v123_v30  ;;  %v500_v32 = vpop.f32.mrb[1].mxu0  ;;  %v254_v29 = vstv %s253_s3 }
  0xf9   :  { %518 = vmatmul.mubr.msk.f32.vlgmr.msra.gmra.mrb[0].mxu1 %vm140_vm2, %v731_v31 }
  0xfa   :  { %528 = vmatprep.mubr.msk.f32.mxu1 %vm621_vm0, %v622_v6  ;;  %557 = vmatpush3.bf16.msra.mxu1 %v556_v18 }
  0xfb   :  { %558 = vmatprep.subr.bf16.mxu1 %v620_v3 }
  0xfe   :  { %560 = vmatpush3.bf16.msra.mxu1 %v559_v20 }
 0x1cc   :  { %v210_v34 = vpop.f32.mrb[0].mxu1 }
 0x1cd   :  { %v211_v35 = vadd.f32 %v444_v33, %v210_v34  ;;  %v519_v36 = vpop.f32.mrb[1].mxu1 }
 0x1cf   :  { %263 = vrot.lane.b32.xlu0 %v211_v35, %s623_s2  ;;  %v222_v37 = vmul.f32 %v211_v35, %v211_v35  ;;  %v217_v42 = vsel %vm216_vm3, %v211_v35, 0.0 }
 0x1d1   :  { %v223_v60 = vsel %vm216_vm3, %v222_v37, 0.0 }
 0x1d3   :  { %271 = vrot.lane.b32.xlu0 %v222_v37, %s623_s2 }
 0x241   :  { %v264_v38 = vpop.permute.xlu0 %263 }
 0x242   :  { %v266_v39 = vsel %vm216_vm3, %v264_v38, 0.0 }
 0x243   :  { %267 = vadd.xlane.f32.xlu1 %v266_v39  ;;  %v452_v39 = vld [vmem:[%s801_s4 + $0x5] ss:$0 sm:$0xff] }
 0x245   :  { %v272_v40 = vpop.permute.xlu0 %271 }
 0x246   :  { %v274_v41 = vsel %vm216_vm3, %v272_v40, 0.0 }
 0x247   :  { %275 = vadd.xlane.f32.xlu1 %v274_v41 }
 0x24b   :  { %218 = vadd.xlane.f32.xlu1 %v217_v42 }
 0x2d0   :  { %v268_v43 = vpop.xlane.xlu1 %267 }
 0x2d1   :  { %v269_v44 = vmul.f32 0.03125, %v268_v43 }
 0x2d3   :  { %v278_v46 = vmul.f32 %v269_v44, %v269_v44  ;;  %v280_v50 = vsub.f32 %v211_v35, %v269_v44 }
 0x2d4   :  { %v276_v45 = vpop.xlane.xlu1 %275 }
 0x2d5   :  { %v277_v47 = vmul.f32 0.03125, %v276_v45 }
 0x2d7   :  { %v279_v48 = vsub.f32 %v277_v47, %v278_v46 }
 0x2d8   :  { %v219_v63 = vpop.xlane.xlu1 %218 }
 0x2d9   :  { %v281_v49 = vadd.f32 1e-05, %v279_v48  ;;  %v221_v0 = vmul.f32 0.03125, %v219_v63 }
 0x2db   :  { %567 = vrsqrt.f32 %v281_v49  ;;  %v227_v2 = vmul.f32 %v221_v0, %v221_v0  ;;  %v229_v7 = vsub.f32 %v211_v35, %v221_v0 }
 0x2e5   :  { %v568_v51 = vpop.eup %567 }
 0x2e6   :  { %v283_v53 = vmul.f32 %v568_v51, %v280_v50 }
 0x2e8   :  { %v284_v55 = vmul.f32 %v446_v52, %v283_v53 }
 0x2ea   :  { %v285_v56 = vadd.f32 %v447_v54, %v284_v55 }
 0x2ec   :  { %v286_v58 = vmax.f32 %v285_v56, 0.0  ;;  %v455_v56 = vld [vmem:[%s801_s4 + $0x7] ss:$0 sm:$0xff] }
 0x2ee   :  { %v287_v59 = vmul.f32 %v448_v57, %v286_v58 }
 0x2f0   :  { %289 = vrot.lane.b32.xlu0 %v287_v59, %s623_s2 }
 0x30f   :  { %224 = vadd.xlane.f32.xlu0 %v223_v60 }
 0x362   :  { %v290_v61 = vpop.permute.xlu0 %289 }
 0x363   :  { %v292_v62 = vsel %vm216_vm3, %v290_v61, 0.0 }
 0x364   :  { %293 = vadd.xlane.f32.xlu1 %v292_v62 }
 0x39c   :  { %v225_v1 = vpop.xlane.xlu0 %224 }
 0x39d   :  { %v226_v4 = vmul.f32 0.03125, %v225_v1 }
 0x39f   :  { %v228_v5 = vsub.f32 %v226_v4, %v227_v2 }
 0x3a1   :  { %v230_v6 = vadd.f32 1e-05, %v228_v5 }
 0x3a3   :  { %569 = vrsqrt.f32 %v230_v6 }
 0x3ad   :  { %v570_v8 = vpop.eup %569 }
 0x3ae   :  { %v232_v9 = vmul.f32 %v570_v8, %v229_v7 }
 0x3b0   :  { %v237_v10 = vmul.f32 %v446_v52, %v232_v9 }
 0x3b2   :  { %v242_v11 = vadd.f32 %v447_v54, %v237_v10  ;;  %v454_v54 = vld [vmem:[%s801_s4 + $0x6] ss:$0 sm:$0xff] }
 0x3b4   :  { %v243_v12 = vmax.f32 %v242_v11, 0.0 }
 0x3b6   :  { %v249_v13 = vmul.f32 %v448_v57, %v243_v12 }
 0x3b8   :  { %v250_v14 = vsel %vm216_vm3, %v249_v13, 0.0 }
 0x3b9   :  { %251 = vadd.xlane.f32.xlu1 %v250_v14 }
 0x3f1   :  { %v294_v22 = vpop.xlane.xlu1 %293 }
 0x3f2   :  { %v297_v23 = vadd.f32 %v296_v21, %v294_v22 }
 0x3f4   :  { %v451_v24 = vmul.f32 -1.442695, %v297_v23 }
 0x3f6   :  { %571 = vpow2.f32 %v451_v24 }
 0x400   :  { %v572_v25 = vpop.eup %571 }
 0x401   :  { %v301_v26 = vadd.f32 1.0, %v572_v25 }
 0x403   :  { %573 = vrcp.f32 %v301_v26 }
 0x40d   :  { %v574_v27 = vpop.eup %573 }
 0x40e   :  { %v305_v28 = vmul.f32 %v574_v27, %v731_v31 }
 0x410   :  { %307 = vrot.lane.b32.xlu1 %v305_v28, %s623_s2 }
 0x446   :  { %v252_v30 = vpop.xlane.xlu1 %251 }
 0x447   :  { %v255_v32 = vadd.f32 %v254_v29, %v252_v30 }
 0x449   :  { %v449_v3 = vmul.f32 -1.442695, %v255_v32 }
 0x44b   :  { %575 = vpow2.f32 %v449_v3 }
 0x455   :  { %v576_v33 = vpop.eup %575 }
 0x456   :  { %v259_v34 = vadd.f32 1.0, %v576_v33 }
 0x458   :  { %577 = vrcp.f32 %v259_v34 }
 0x462   :  { %v578_v35 = vpop.eup %577 }
 0x463   :  { %v304_v36 = vmul.f32 %v578_v35, %v731_v31 }
 0x482   :  { %v308_v37 = vpop.permute.xlu1 %307 }
 0x483   :  { %v310_v38 = vadd.f32 %v308_v37, %v304_v36 }
 0x485   :  { %529 = vmatmul.mubr.msk.f32.vlgmr.msra.gmra.mrb[2].mxu1 %vm216_vm3, %v310_v38 }
 0x558   :  { %v389_v40 = vpop.f32.mrb[2].mxu1 }
 0x559   :  { %v390_v41 = vadd.f32 %v452_v39, %v389_v40  ;;  %v530_v42 = vpop.f32.mrb[3].mxu1 }
 0x55b   :  { %v395_v43 = vsel %vm216_vm3, %v390_v41, 0.0  ;;  %v399_v44 = vmul.f32 %v390_v41, %v390_v41 }
 0x55c   :  { %396 = vadd.xlane.f32.xlu1 %v395_v43 }
 0x55d   :  { %v400_v45 = vsel %vm216_vm3, %v399_v44, 0.0 }
 0x55e   :  { %401 = vadd.xlane.f32.xlu0 %v400_v45 }
 0x5e9   :  { %v397_v46 = vpop.xlane.xlu1 %396 }
 0x5ea   :  { %v398_v31 = vmul.f32 0.03125, %v397_v46 }
 0x5eb   :  { %v402_v47 = vpop.xlane.xlu0 %401 }
 0x5ec   :  { %v404_v48 = vmul.f32 %v398_v31, %v398_v31  ;;  %v403_v49 = vmul.f32 0.03125, %v402_v47  ;;  %v406_v52 = vsub.f32 %v390_v41, %v398_v31 }
 0x5ee   :  { %v405_v50 = vsub.f32 %v403_v49, %v404_v48 }
 0x5f0   :  { %v407_v51 = vadd.f32 1e-05, %v405_v50 }
 0x5f2   :  { %579 = vrsqrt.f32 %v407_v51 }
 0x5fc   :  { %v580_v53 = vpop.eup %579 }
 0x5fd   :  { %v409_v55 = vmul.f32 %v580_v53, %v406_v52 }
 0x5ff   :  { %v414_v57 = vmul.f32 %v454_v54, %v409_v55 }
 0x601   :  { %v419_v58 = vadd.f32 %v455_v56, %v414_v57 }
 0x603   :  { %v420_v59 = vmax.f32 %v419_v58, 0.0 }
 0x605   :  { %v421_v60 = vsel %vm216_vm3, %v420_v59, %v578_v35 }
 0x606   :  { %v423_v61 = vsel %vm422_vm4, %v421_v60, %v574_v27 }
 0x607   :  { %v424_v62 = vpack.c.bf16 %v423_v61, %v423_v61 }
 0x609   :  { %426 = vst.msk [vmem:[#allocation5] sm:$0xf] %vm425_vm5, %v424_v62 }
 0x60a   :  { %604 = shalt.err (!%p601_p9)
}
 0x60b   :  { %s605_s1 = scalar_lea.hbm %s803_s6, 64 }
 0x60c   :  { %p606_p10 = scmp.ne.s32.totalorder %s803_s6, %s605_s1  ;;  %p609_p11 = scmp.lt.u32.totalorder %s605_s1, %s803_s6 }
 0x60e   :  { %p611_p12 = pnand %p609_p11, %p606_p10 }
 0x610   :  { %614 = shalt.err (!%p611_p12)
}
 0x611   :  { %436 = dma.vmem_to_hbm [thread:$0]  %s434_s11, 64, %s803_s6, [#allocation3]  }
 0x612   :  { %617 = dma.done.wait [#allocation3], 64  }
 0x613   :  { %618 = vsyncadd [#allocation3], 4294967232 }
 0x614   :  { %440 = vsyncpa [#allocation3], 1 }
 0x615   :  { %441 = vsyncpa [#allocation4], 1 }

</bundles_post_ra>
